<compile_context>
chip_gen: v5e
topology: v5e:2x2
jax: 0.10.0
libtpu: 0.0.40
codegen_flags: <defaults>
</compile_context>

<pallas_src>
import functools

import jax
import jax.numpy as jnp
from jax.experimental import pallas as pl
from jax.experimental.pallas import tpu as pltpu


def _conv_block_kernel(xa_ref, xb_ref, w_ref, shift_ref, o_ref, *, KH, KW, Wp, TP):
    """Fused conv + folded-BN/bias + ReLU for one tile of TP output pixels.

    xa_ref:    (1, Cin, TP)      current pixel tile of the flattened padded image
    xb_ref:    (1, Cin, HALO)    next HALO pixels (covers all KH*KW shifted windows)
    w_ref:     (Cout_p, Kdim)    BN-scale-folded weights, Kdim = KH*KW*Cin
    shift_ref: (Cout_p, 1)       folded bias*scale + beta - mean*scale (f32)
    o_ref:     (1, Cout_p, TP)   output tile: channels in sublanes, pixels in lanes
    """
    xa = xa_ref[0, :, :]                                    # (Cin, TP)
    xb = xb_ref[0, :, :]                                    # (Cin, HALO)
    xw = jnp.concatenate([xa, xb], axis=-1)                 # (Cin, TP + HALO)

    # In-VMEM im2col^T: tap (dy, dx) is a constant lane shift of dy*Wp + dx.
    taps = [xw[:, dy * Wp + dx: dy * Wp + dx + TP]
            for dy in range(KH) for dx in range(KW)]        # each (Cin, TP)
    patches = taps[0] if len(taps) == 1 else jnp.concatenate(taps, axis=0)  # (Kdim, TP)

    acc = jnp.dot(w_ref[...], patches,
                  preferred_element_type=jnp.float32)       # (Cout_p, TP) f32
    acc = jnp.maximum(acc + shift_ref[...], 0.0)            # folded conv-bias + BN(eval), ReLU
    # Dropout: nn.Dropout is identity in eval mode -> no-op here.
    o_ref[0, :, :] = acc.astype(o_ref.dtype)


def conv2d_block(x_nchw, weight, bias, bn_gamma, bn_beta, bn_mean, bn_var,
                 eps=1e-5, compute_dtype=jnp.bfloat16):
    """Forward pass of Conv2DBlock (eval mode).

    x_nchw : (N, Cin, H, W)      float32
    weight : (Cout, Cin, KH, KW) float32 (PyTorch conv layout)
    compute_dtype: dtype fed to the MXU (bf16 default: native on v5e/v6e/v7x and
                   halves streamed HBM bytes; accumulation/epilogue stay f32).
    returns: (N, Cout, H, W)     float32
    """
    N, Cin, H, W = x_nchw.shape
    Cout, _, KH, KW = weight.shape
    Kdim = KH * KW * Cin

    # --- fold conv bias + BatchNorm (running stats) into weights / shift -------
    scale = bn_gamma / jnp.sqrt(bn_var + eps)                          # (Cout,)
    shift = bias * scale + (bn_beta - bn_mean * scale)                 # (Cout,)
    w_mat = (jnp.transpose(weight, (0, 2, 3, 1))                       # (Cout, KH, KW, Cin)
             * scale[:, None, None, None]).reshape(Cout, Kdim)         # tap order (dy, dx, cin)

    Cout_p = ((Cout + 7) // 8) * 8                                     # sublane pad only (no 128-lane pad)
    w_mat_p = jnp.pad(w_mat, ((0, Cout_p - Cout), (0, 0))).astype(compute_dtype)
    shift_p = jnp.pad(shift, (0, Cout_p - Cout)).reshape(Cout_p, 1).astype(jnp.float32)

    # --- PyTorch 'same' padding (low side = total // 2, matches even-K split) --
    ph, pw = KH - 1, KW - 1
    ph_lo, pw_lo = ph // 2, pw // 2
    Hp, Wp = H + ph, W + pw
    x_pad = jnp.pad(x_nchw, ((0, 0), (0, 0),
                             (ph_lo, ph - ph_lo), (pw_lo, pw - pw_lo))).astype(compute_dtype)

    # --- flatten padded pixels; every tap becomes a constant flat shift --------
    # Output is computed for the H*Wp padded-grid positions (the Wp-W extra
    # columns per row are garbage, discarded by the wrapper slice below).
    shift_max = (KH - 1) * Wp + (KW - 1)                    # largest tap shift
    HALO = max(128, ((shift_max + 127) // 128) * 128)       # lane-aligned halo block
    P_out = H * Wp
    # Pixels per grid step: multiple of HALO (hence of 128); ~1024 for real sizes,
    # smaller if needed so the toy still gets several grid steps.
    TP = HALO * max(1, min(max(1, 1024 // HALO), max(1, P_out // (2 * HALO))))
    T = pl.cdiv(P_out, TP)
    P_pad = T * TP
    L = P_pad + HALO                                        # flat length incl. zero tail

    x_flat = x_pad.reshape(N, Cin, Hp * Wp)
    x_flat = jnp.pad(x_flat, ((0, 0), (0, 0), (0, L - Hp * Wp)))

    kernel = functools.partial(_conv_block_kernel, KH=KH, KW=KW, Wp=Wp, TP=TP)

    in_item = jnp.dtype(compute_dtype).itemsize
    cost = pl.CostEstimate(
        flops=2 * N * T * TP * Kdim * Cout_p,
        transcendentals=0,
        bytes_accessed=(N * T * Cin * (TP + HALO) * in_item      # streamed activations (+halo)
                        + Cout_p * Kdim * in_item + Cout_p * 4   # resident weights + shift
                        + N * T * Cout_p * TP * 4))              # f32 output

    out_flat = pl.pallas_call(
        kernel,
        out_shape=jax.ShapeDtypeStruct((N, Cout_p, P_pad), jnp.float32),
        grid_spec=pltpu.PrefetchScalarGridSpec(
            num_scalar_prefetch=0,
            grid=(N, T),
            in_specs=[
                # current pixel tile (streamed)
                pl.BlockSpec((1, Cin, TP), lambda n, t: (n, 0, t)),
                # halo: next HALO pixels of the same flat image (streamed, small)
                pl.BlockSpec((1, Cin, HALO),
                             lambda n, t: (n, 0, (t + 1) * (TP // HALO))),
                # folded weights + shift (resident: constant block index)
                pl.BlockSpec((Cout_p, Kdim), lambda n, t: (0, 0)),
                pl.BlockSpec((Cout_p, 1), lambda n, t: (0, 0)),
            ],
            out_specs=pl.BlockSpec((1, Cout_p, TP), lambda n, t: (n, 0, t)),
        ),
        compiler_params=pltpu.CompilerParams(
            dimension_semantics=("parallel", "parallel")),
        cost_estimate=cost,
    )(x_flat, x_flat, w_mat_p, shift_p)

    # (N, Cout_p, P_pad) -> NCHW with no transpose: slice channels, drop garbage
    # tail / garbage columns of the padded-width grid.
    out = out_flat[:, :Cout, :H * Wp].reshape(N, Cout, H, Wp)[:, :, :, :W]
    return out


if __name__ == "__main__":
    # Conv2DBlock(in_channels=4, out_channels=8, kernel_size=3,
    #             activation=ReLU, batch_normalization=True, dropout_rate=0.1), eval mode.
    N, Cin, H, W = 2, 4, 16, 16
    Cout, K = 8, 3

    key = jax.random.PRNGKey(0)
    kx, kw, kb, kg, kbt, km, kv = jax.random.split(key, 7)

    x = jax.random.normal(kx, (N, Cin, H, W), jnp.float32)
    weight = jax.random.normal(kw, (Cout, Cin, K, K), jnp.float32) * 0.1
    bias = jax.random.normal(kb, (Cout,), jnp.float32) * 0.1
    bn_gamma = 1.0 + 0.1 * jax.random.normal(kg, (Cout,), jnp.float32)
    bn_beta = 0.1 * jax.random.normal(kbt, (Cout,), jnp.float32)
    bn_mean = 0.1 * jax.random.normal(km, (Cout,), jnp.float32)
    bn_var = 1.0 + 0.1 * jax.random.uniform(kv, (Cout,), jnp.float32)

    fwd = jax.jit(conv2d_block, static_argnames=("eps", "compute_dtype"))

    # Pure-JAX reference (same eval-mode semantics).
    ref = jax.lax.conv_general_dilated(
        x, weight, window_strides=(1, 1), padding="SAME",
        dimension_numbers=("NCHW", "OIHW", "NCHW"))
    ref = ref + bias[None, :, None, None]
    scale = bn_gamma / jnp.sqrt(bn_var + 1e-5)
    ref = ref * scale[None, :, None, None] + (bn_beta - bn_mean * scale)[None, :, None, None]
    ref = jnp.maximum(ref, 0.0)

    # Default path: bf16 MXU inputs, f32 accumulation/epilogue.
    out = fwd(x, weight, bias, bn_gamma, bn_beta, bn_mean, bn_var)
    jax.block_until_ready(out)
    assert out.shape == (N, Cout, H, W)
    assert jnp.allclose(out, ref, atol=5e-2, rtol=5e-2)

    # Full-f32 path (tighter check of the kernel math / folding).
    out_f32 = fwd(x, weight, bias, bn_gamma, bn_beta, bn_mean, bn_var,
                  compute_dtype=jnp.float32)
    jax.block_until_ready(out_f32)
    assert jnp.allclose(out_f32, ref, atol=1e-3, rtol=1e-3)

    print("KERNEL_OK")
</pallas_src>

<mosaic_0001>
module attributes {stable_mosaic.version = 11 : i64} {
  func.func @_conv_block_kernel(%arg0: i32, %arg1: i32, %arg2: memref<1x4x128xbf16, #tpu.memory_space<vmem>>, %arg3: memref<1x4x128xbf16, #tpu.memory_space<vmem>>, %arg4: memref<8x36xbf16, #tpu.memory_space<vmem>>, %arg5: memref<8x1xf32, #tpu.memory_space<vmem>>, %arg6: memref<1x8x128xf32, #tpu.memory_space<vmem>>) attributes {dimension_semantics = [#tpu.dimension_semantics<parallel>, #tpu.dimension_semantics<parallel>], iteration_bounds = array<i64: 2, 3>, scalar_prefetch = 0 : i64, scratch_operands = 0 : i64, tpu.core_type = #tpu.core_type<tc>, window_params = [{transform_indices = @transform_0, window_bounds = array<i64: 1, 4, 128>}, {transform_indices = @transform_1, window_bounds = array<i64: 1, 4, 128>}, {pipeline_mode = #tpu.pipeline_mode<synchronous>, transform_indices = @transform_2, window_bounds = array<i64: 8, 36>}, {pipeline_mode = #tpu.pipeline_mode<synchronous>, transform_indices = @transform_3, window_bounds = array<i64: 8, 1>}, {transform_indices = @transform_4, window_bounds = array<i64: 1, 8, 128>}]} {
    %c0 = arith.constant 0 : index
    %c0_0 = arith.constant 0 : index
    %c0_1 = arith.constant 0 : index
    %0 = vector.load %arg2[%c0, %c0_0, %c0_1] : memref<1x4x128xbf16, #tpu.memory_space<vmem>>, vector<1x4x128xbf16>
    %1 = vector.shape_cast %0 : vector<1x4x128xbf16> to vector<4x128xbf16>
    %c0_2 = arith.constant 0 : index
    %c0_3 = arith.constant 0 : index
    %c0_4 = arith.constant 0 : index
    %2 = vector.load %arg3[%c0_2, %c0_3, %c0_4] : memref<1x4x128xbf16, #tpu.memory_space<vmem>>, vector<1x4x128xbf16>
    %3 = vector.shape_cast %2 : vector<1x4x128xbf16> to vector<4x128xbf16>
    %4 = tpu.concatenate %1, %3 in 1 : vector<4x128xbf16>, vector<4x128xbf16> -> vector<4x256xbf16>
    %5 = vector.extract_strided_slice %4 {offsets = [0, 0], sizes = [4, 128], strides = [1, 1]} : vector<4x256xbf16> to vector<4x128xbf16>
    %6 = vector.extract_strided_slice %4 {offsets = [0, 1], sizes = [4, 128], strides = [1, 1]} : vector<4x256xbf16> to vector<4x128xbf16>
    %7 = vector.extract_strided_slice %4 {offsets = [0, 2], sizes = [4, 128], strides = [1, 1]} : vector<4x256xbf16> to vector<4x128xbf16>
    %8 = vector.extract_strided_slice %4 {offsets = [0, 18], sizes = [4, 128], strides = [1, 1]} : vector<4x256xbf16> to vector<4x128xbf16>
    %9 = vector.extract_strided_slice %4 {offsets = [0, 19], sizes = [4, 128], strides = [1, 1]} : vector<4x256xbf16> to vector<4x128xbf16>
    %10 = vector.extract_strided_slice %4 {offsets = [0, 20], sizes = [4, 128], strides = [1, 1]} : vector<4x256xbf16> to vector<4x128xbf16>
    %11 = vector.extract_strided_slice %4 {offsets = [0, 36], sizes = [4, 128], strides = [1, 1]} : vector<4x256xbf16> to vector<4x128xbf16>
    %12 = vector.extract_strided_slice %4 {offsets = [0, 37], sizes = [4, 128], strides = [1, 1]} : vector<4x256xbf16> to vector<4x128xbf16>
    %13 = vector.extract_strided_slice %4 {offsets = [0, 38], sizes = [4, 128], strides = [1, 1]} : vector<4x256xbf16> to vector<4x128xbf16>
    %14 = tpu.concatenate %5, %6, %7, %8, %9, %10, %11, %12, %13 in 0 : vector<4x128xbf16>, vector<4x128xbf16>, vector<4x128xbf16>, vector<4x128xbf16>, vector<4x128xbf16>, vector<4x128xbf16>, vector<4x128xbf16>, vector<4x128xbf16>, vector<4x128xbf16> -> vector<36x128xbf16>
    %c0_5 = arith.constant 0 : index
    %c0_6 = arith.constant 0 : index
    %15 = vector.load %arg4[%c0_5, %c0_6] : memref<8x36xbf16, #tpu.memory_space<vmem>>, vector<8x36xbf16>
    %cst = arith.constant dense<0.000000e+00> : vector<8x128xf32>
    %16 = tpu.matmul %15, %14, %cst {dimension_numbers = #tpu.dot_dimension_numbers<[1], [0], [0], [1], [0, 0, 1, 1], [], []>} : vector<8x36xbf16>, vector<36x128xbf16>, vector<8x128xf32> -> vector<8x128xf32>
    %c0_7 = arith.constant 0 : index
    %c0_8 = arith.constant 0 : index
    %17 = vector.load %arg5[%c0_7, %c0_8] : memref<8x1xf32, #tpu.memory_space<vmem>>, vector<8x1xf32>
    %18 = vector.broadcast %17 : vector<8x1xf32> to vector<8x128xf32>
    %19 = arith.addf %16, %18 : vector<8x128xf32>
    %cst_9 = arith.constant 0.000000e+00 : f32
    %20 = vector.broadcast %cst_9 : f32 to vector<8x128xf32>
    %21 = arith.maximumf %19, %20 : vector<8x128xf32>
    %c0_10 = arith.constant 0 : index
    %c0_11 = arith.constant 0 : index
    %c0_12 = arith.constant 0 : index
    %22 = vector.load %arg6[%c0_10, %c0_11, %c0_12] : memref<1x8x128xf32, #tpu.memory_space<vmem>>, vector<1x8x128xf32>
    %23 = vector.shape_cast %22 : vector<1x8x128xf32> to vector<8x128xf32>
    %24 = vector.shape_cast %21 : vector<8x128xf32> to vector<1x8x128xf32>
    tpu.vector_store %arg6[%c0_10, %c0_11, %c0_12], %24 {strides = array<i32>} : memref<1x8x128xf32, #tpu.memory_space<vmem>>, vector<1x8x128xf32>,
    return
  }
  func.func @transform_0(%arg0: i32, %arg1: i32) -> (i32, i32, i32) {
    %c0_i32 = arith.constant 0 : i32
    %c0_i32_0 = arith.constant 0 : i32
    return %arg0, %c0_i32, %arg1 : i32, i32, i32
  }
  func.func @transform_1(%arg0: i32, %arg1: i32) -> (i32, i32, i32) {
    %c1_i32 = arith.constant 1 : i32
    %0 = arith.addi %arg1, %c1_i32 : i32
    %c1_i32_0 = arith.constant 1 : i32
    %1 = arith.muli %0, %c1_i32_0 : i32
    %c0_i32 = arith.constant 0 : i32
    %c0_i32_1 = arith.constant 0 : i32
    return %arg0, %c0_i32, %1 : i32, i32, i32
  }
  func.func @transform_2(%arg0: i32, %arg1: i32) -> (i32, i32) {
    %c0_i32 = arith.constant 0 : i32
    %c0_i32_0 = arith.constant 0 : i32
    %c0_i32_1 = arith.constant 0 : i32
    return %c0_i32, %c0_i32_0 : i32, i32
  }
  func.func @transform_3(%arg0: i32, %arg1: i32) -> (i32, i32) {
    %c0_i32 = arith.constant 0 : i32
    %c0_i32_0 = arith.constant 0 : i32
    %c0_i32_1 = arith.constant 0 : i32
    return %c0_i32, %c0_i32_0 : i32, i32
  }
  func.func @transform_4(%arg0: i32, %arg1: i32) -> (i32, i32, i32) {
    %c0_i32 = arith.constant 0 : i32
    %c0_i32_0 = arith.constant 0 : i32
    return %arg0, %c0_i32, %arg1 : i32, i32, i32
  }
}

</mosaic_0001>

<bundles_post_ra>
// kernel: conv2d_block.1
= control target key start
LH: loop header
LB: loop body
LE: loop exit
PB: predicated region body
PF: predicated region fallthrough
CT: control target
= control target key end

     0   :  { %s617_s15 = smov 0   ;;  %s619_s16 = smov 0   ;;  %s703_s0 = inlined_call_operand.vmem [shape: bf16[2,4,512], index: 0, kind: input, shape index: {}, may-alias: {0,1}]   ;;  %s704_s1 = inlined_call_operand.vmem [shape: bf16[2,4,512], index: 1, kind: input, shape index: {}, may-alias: {0,1}]   ;;  %s705_s2 = inlined_call_operand.vmem [shape: bf16[8,36], index: 2, kind: input, shape index: {}]   ;;  %s706_s3 = inlined_call_operand.vmem [shape: f32[8,1], index: 3, kind: input, shape index: {}]   ;;  %s707_s4 = inlined_call_operand.vmem [shape: f32[2,8,384], index: 4, kind: output, shape index: {}]  }
   0x1   :  { %s621_s17 = smov 0   ;;  %s623_s18 = smov 0  }
   0x2   :  { %s625_s19 = smov 0  }
   0x3 LB: > { %s23_s20 = sadd.s32 1, %s573_s17  ;;  %s26_s21 = sadd.s32 1, %s577_s18  ;;  %s581_s19 = sphi %s625_s19, %s14_s19   ;;  %s577_s18 = sphi %s623_s18, %s711_s18   ;;  %s573_s17 = sphi %s621_s17, %s710_s17   ;;  %s569_s16 = sphi %s619_s16, %s709_s16   ;;  %s565_s15 = sphi %s617_s15, %s708_s15  }
   0x4   : > { %p24_p0 = scmp.ge.s32.totalorder %s23_s20, 3  ;;  %p482_p1 = scmp.ge.s32.totalorder %s581_s19, 1 }
   0x5   : > { %p200_p2 = scmp.lt.s32.totalorder %s581_s19, 7 }
   0x6   : > { %s713_s20 = smov (%p24_p0, %s23_s20), 0  ;;  %s715_s21 = smov (!%p24_p0, %s26_s21), %s577_s18 }
   0x7   : > { %p201_p3 = pnand %p482_p1, %p200_p2  ;;  %p28_p4 = scmp.ge.s32.totalorder %s715_s21, 2 }
   0x8   : > { %p241_p5 = scmp.lt.s32.totalorder (!%p201_p3), %s569_s16, 1  ;;  %p243_p6 = scmp.lt.s32.totalorder (!%p201_p3), %s565_s15, 3 }
   0x9   : > { %s717_s21 = smov (%p28_p4, %s715_s21), 0  ;;  %204 = sbr.rel (%p201_p3) target bundleno = 315 (0x13b), region = 36 }
   0xa   : > { %s249_s24 = sadd.s32 (!%p201_p3), 1, %s565_s15  ;;  %s583_s30 = smov (!%p201_p3), 109  }
   0xb   : > { %p252_p7 = scmp.lt.s32.totalorder (!%p201_p3), %s249_s24, 3  ;;  %s584_s5 = smov (!%p201_p3), 90  }
   0xc   : > { %s585_s8 = smov (!%p201_p3), 108   ;;  %s586_s12 = smov (!%p201_p3), 92  }
   0xd   : > { %s587_s13 = smov (!%p201_p3), 91   ;;  %s588_s14 = smov (!%p201_p3), 127  }
   0xe   : > { %s719_s16 = smov (!%p241_p5, %s569_s16), 1  ;;  %s721_s24 = smov (!%p252_p7, %s249_s24), 3  ;;  %vm324_vm0 = vcmask 736256   ;;  %vm326_vm1 = vcmask 1041408   ;;  %v346_v16 = vld [vmem:[%s706_s3] sm:$0xff]  ;;  %v591_v17 = vmov 0  }
   0xf   : > { %s244_s22 = scalar_select %p243_p6, %s565_s15, 3  ;;  %541 = vset.pattern.permute.xlu1 %v591_v17  ;;  %542 = vset.pattern.permute.xlu0 %v591_v17  ;;  %vm300_vm2 = vcmask 891904   ;;  %vm306_vm3 = vcmask 883712   ;;  %vm312_vm4 = vcmask 752640   ;;  %vm318_vm5 = vcmask 744448  }
  0x10   : > { %s483_s23 = sshll.u32 %s719_s16, 2  ;;  %vm330_vm6 = vcmask 1043456   ;;  %vm333_vm7 = vcmask 1045504   ;;  %vm278_vm8 = vcmask 1039360   ;;  %vm286_vm9 = vcmask 1031168   ;;  %p261_p8 = scmp.lt.s32.totalorder %s565_s15, 2 }
  0x11   : > { %s246_s25 = sadd.s32 %s483_s23, %s244_s22  ;;  %s255_s6 = sadd.s32 %s483_s23, %s721_s24  ;;  %vm294_vm10 = vcmask 900096   ;;  %v345_v41 = vld [vmem:[%s705_s2] sm:$0xf]  ;;  %vm352_vm11 = vcmask 293888  }
  0x12   : > { %s484_s26 = sshll.u32 %s246_s25, 1  ;;  %s486_s7 = sshll.u32 %s255_s6, 1 }
  0x13   : > { %s248_s29 = scalar_lea.vmem %s703_s0, %s484_s26  ;;  %s257_s11 = scalar_lea.vmem %s704_s1, %s486_s7 }
  0x14   : > { %v658_v0 = vld [vmem:[%s248_s29] sm:$0x3]  ;;  %s589_s22 = smov 126   ;;  %s590_s23 = smov 110  }
  0x15   : > { %296 = vrot.lane.b32.xlu1 %v658_v0, %s583_s30  ;;  %320 = vrot.lane.b32.xlu0 %v658_v0, %s584_s5  ;;  %v272_v1 = vrot.slane %v658_v0, 6  ;;  %v269_v2 = vld [vmem:[%s257_s11] sm:$0x3]  ;;  %v280_v5 = vrot.slane %v658_v0, 4  ;;  %v288_v6 = vrot.slane %v658_v0, 2  ;;  %s491_s28 = smul.u32 3, %s719_s16 }
  0x16   : > { %v273_v3 = vrot.slane %v269_v2, 6  ;;  %v281_v4 = vrot.slane %v269_v2, 4  ;;  %v289_v7 = vrot.slane %v269_v2, 2  ;;  %s723_s15 = smov (!%p261_p8, %s565_s15), 2 }
  0x17   : > { %302 = vrot.lane.b32.xlu2 %v272_v1, %s585_s8  ;;  %s264_s29 = sadd.s32 %s491_s28, %s723_s15 }
  0x1d   : > { %298 = vrot.lane.b32.xlu1 %v269_v2, %s583_s30  ;;  %322 = vrot.lane.b32.xlu0 %v269_v2, %s584_s5  ;;  %s487_s30 = sshll.u32 %s264_s29, 3 }
  0x1e   : > { %s266_s7 = scalar_lea.vmem %s707_s4, %s487_s30 }
  0x1f   : > { %304 = vrot.lane.b32.xlu2 %v273_v3, %s585_s8 }
  0x25   : > { %310 = vrot.lane.b32.xlu1 %v281_v4, %s586_s12  ;;  %308 = vrot.lane.b32.xlu0 %v280_v5, %s586_s12 }
  0x27   : > { %314 = vrot.lane.b32.xlu2 %v288_v6, %s587_s13 }
  0x2d   : > { %316 = vrot.lane.b32.xlu0 %v289_v7, %s587_s13  ;;  %274 = vrot.lane.b32.xlu1 %v272_v1, %s588_s14 }
  0x2f   : > { %276 = vrot.lane.b32.xlu2 %v273_v3, %s588_s14 }
  0x35   : > { %282 = vrot.lane.b32.xlu0 %v280_v5, %s589_s22  ;;  %284 = vrot.lane.b32.xlu1 %v281_v4, %s589_s22 }
  0x37   : > { %290 = vrot.lane.b32.xlu2 %v288_v6, %s590_s23 }
  0x3d   : > { %292 = vrot.lane.b32.xlu0 %v289_v7, %s590_s23  ;;  %349 = vperm.xlu1 %541, %v346_v16  }
  0x71   : > { %v303_v8 = vpop.permute.xlu2 %302 }
  0x79   : > { %v305_v14 = vpop.permute.xlu2 %304 }
  0x7a   : > { %v307_v22 = vsel %vm306_vm3, %v303_v8, %v305_v14 }
  0x81   : > { %v315_v20 = vpop.permute.xlu2 %314 }
  0x87   : > { %v297_v9 = vpop.permute.xlu1 %296  ;;  %v321_v10 = vpop.permute.xlu0 %320 }
  0x89   : > { %v277_v30 = vpop.permute.xlu2 %276 }
  0x8f   : > { %v299_v11 = vpop.permute.xlu1 %298  ;;  %v323_v12 = vpop.permute.xlu0 %322 }
  0x90   : > { %v325_v13 = vsel %vm324_vm0, %v321_v10, %v323_v12  ;;  %v301_v21 = vsel %vm300_vm2, %v297_v9, %v299_v11 }
  0x91   : > { %v357_v15 = vsel %vm326_vm1, %v325_v13, 0  ;;  %v339_v24 = vsel %vm326_vm1, %v301_v21, %v307_v22  ;;  %v291_v36 = vpop.permute.xlu2 %290 }
  0x92   : > { %364 = vmatpush.bf16.msra.mxu0 %v357_v15 }
  0x97   : > { %v311_v18 = vpop.permute.xlu1 %310  ;;  %v309_v19 = vpop.permute.xlu0 %308 }
  0x98   : > { %v313_v23 = vsel %vm312_vm4, %v309_v19, %v311_v18 }
  0x99   : > { %v341_v28 = vsel %vm330_vm6, %v339_v24, %v313_v23 }
  0x9f   : > { %v317_v25 = vpop.permute.xlu0 %316  ;;  %v275_v27 = vpop.permute.xlu1 %274 }
  0xa0   : > { %v319_v26 = vsel %vm318_vm5, %v315_v20, %v317_v25  ;;  %v279_v32 = vsel %vm278_vm8, %v275_v27, %v277_v30 }
  0xa1   : > { %v343_v29 = vsel %vm333_vm7, %v341_v28, %v319_v26  ;;  %v329_v34 = vsel %vm326_vm1, %v658_v0, %v279_v32 }
  0xa2   : > { %365 = vmatpush.bf16.msra.mxu0 %v343_v29 }
  0xa7   : > { %v283_v31 = vpop.permute.xlu0 %282  ;;  %v285_v33 = vpop.permute.xlu1 %284 }
  0xa8   : > { %v287_v35 = vsel %vm286_vm9, %v283_v31, %v285_v33 }
  0xa9   : > { %v332_v39 = vsel %vm330_vm6, %v329_v34, %v287_v35 }
  0xaf   : > { %v293_v37 = vpop.permute.xlu0 %292  ;;  %v350_v42 = vpop.permute.xlu1 %349 }
  0xb0   : > { %v295_v38 = vsel %vm294_vm10, %v291_v36, %v293_v37 }
  0xb1   : > { %v335_v40 = vsel %vm333_vm7, %v332_v39, %v295_v38 }
  0xb2   : > { %366 = vmatpush.bf16.msra.mxu0 %v335_v40 }
  0xb5   : > { %488 = vmatmul.msk.bf16.vlgmr.msra.gmra.mxu0 %vm352_vm11, %v345_v41 }
 0x132   : > { %v368_v43 = vpop.f32.mrf.mxu0 }
 0x133   : > { %v369_v44 = vadd.f32 %v368_v43, %v350_v42 }
 0x135   : > { %v372_v45 = vmax.f32 %v369_v44, 0.0 }
 0x137   : > { %373 = vst [vmem:[%s266_s7] sm:$0xff] %v372_v45 }
 0x13a   : > { %v370_v46 = vpop.f32.mrf.mxu0 }
 0x13b PF: > { %s14_s19 = sadd.s32 1, %s581_s19   ;;  %s708_s15 = smov %s573_s17 }
 0x13c   : > { %p11_p9 = scmp.ge.s32.totalorder %s14_s19, 8   ;;  %s709_s16 = smov %s577_s18 }
 0x13d   : > { %s710_s17 = smov %s713_s20  ;;  %s711_s18 = smov %s717_s21 }
 0x13e   :  { %13 = sbr.rel (!%p11_p9) target bundleno = 3 (0x3), region = 69 }

</bundles_post_ra>
